<compile_context>
chip_gen: v6e
topology: v6e:2x2x1
jax: 0.10.0
libtpu: 0.0.40
codegen_flags: <defaults>
</compile_context>

<pallas_src>
import functools

import jax
import jax.numpy as jnp
from jax import lax
from jax.experimental import pallas as pl
from jax.experimental.pallas import tpu as pltpu


_CUBIC_A = -0.75  # PyTorch's bicubic convolution coefficient.


def _round_up(x, m):
    return ((x + m - 1) // m) * m


def _cubic_weights(t):
    """4-tap cubic-convolution weights (taps at floor-1..floor+2), a=-0.75."""
    a = _CUBIC_A
    w0 = ((a * (t + 1.0) - 5.0 * a) * (t + 1.0) + 8.0 * a) * (t + 1.0) - 4.0 * a
    w1 = ((a + 2.0) * t - (a + 3.0)) * t * t + 1.0
    u = 1.0 - t
    w2 = ((a + 2.0) * u - (a + 3.0)) * u * u + 1.0
    w3 = ((a * (u + 1.0) - 5.0 * a) * (u + 1.0) + 8.0 * a) * (u + 1.0) - 4.0 * a
    return w0, w1, w2, w3


def _interp_matrix_1d(out_size, in_size):
    """(out_size, in_size) matrix M with M @ v == PyTorch 1-D bicubic resize
    (align_corners=False, border-replicate index clamping)."""
    scale = in_size / out_size
    dst = jnp.arange(out_size, dtype=jnp.float32)
    src = (dst + 0.5) * scale - 0.5                   # align_corners=False mapping
    src_floor = jnp.floor(src)
    t = src - src_floor
    w = jnp.stack(_cubic_weights(t), axis=1)                              # (out, 4)
    idx = src_floor[:, None].astype(jnp.int32) + jnp.arange(-1, 3)[None, :]
    idx = jnp.clip(idx, 0, in_size - 1)                                   # (out, 4)
    onehot = (idx[:, :, None] == jnp.arange(in_size)[None, None, :]).astype(jnp.float32)
    return jnp.sum(w[:, :, None] * onehot, axis=1)                        # (out, in)


def build_interpolation_matrix(old_grid, new_grid, num_detection_tokens,
                               dtype=jnp.float32):
    """Full (seq_out, seq_in) matrix: cls passthrough + bicubic resize + det passthrough."""
    old_ph, old_pw = old_grid
    new_ph, new_pw = new_grid
    a_h = _interp_matrix_1d(new_ph, old_ph)           # (new_ph, old_ph)
    a_w = _interp_matrix_1d(new_pw, old_pw)           # (new_pw, old_pw)
    k_patch = jnp.kron(a_h, a_w)                      # (new_ph*new_pw, old_ph*old_pw)
    n_old = old_ph * old_pw
    n_new = new_ph * new_pw
    seq_in = 1 + n_old + num_detection_tokens
    seq_out = 1 + n_new + num_detection_tokens
    k = jnp.zeros((seq_out, seq_in), jnp.float32)
    k = k.at[0, 0].set(1.0)                                                # cls token
    k = k.at[1:1 + n_new, 1:1 + n_old].set(k_patch)                        # patch resize
    k = k.at[1 + n_new:, 1 + n_old:].set(jnp.eye(num_detection_tokens))    # det tokens
    return k.astype(dtype)


def _pos_interp_kernel(k_ref, x_ref, o_ref):
    # One MXU GEMM per (batch, row-tile) grid step:
    #   (row_tile, seq_in) @ (seq_in, hidden) -> (row_tile, hidden)
    # precision=HIGHEST keeps full f32 accuracy for f32 inputs (no bf16 demotion);
    # for bf16 inputs it is a no-op and accumulation is still f32.
    acc = jnp.dot(k_ref[...], x_ref[0],
                  preferred_element_type=jnp.float32,
                  precision=lax.Precision.HIGHEST)
    o_ref[0] = acc.astype(o_ref.dtype)


@functools.partial(jax.jit, static_argnames=("row_tile",))
def interpolate_pos_embed(pos_embed, interp_matrix, *, row_tile=256):
    """pos_embed: (B, seq_in, H); interp_matrix: (seq_out, seq_in) -> (B, seq_out, H)."""
    b, seq_in, hidden = pos_embed.shape
    seq_out, k_in = interp_matrix.shape
    assert k_in == seq_in, (k_in, seq_in)

    k = interp_matrix.astype(pos_embed.dtype)

    # Tile output rows: multiple of 8 (sublane), capped at `row_tile` so the
    # per-step VMEM footprint stays well inside the default scoped VMEM on all
    # of v5e/v6e/v7x.  Pad K with zero rows so the grid divides evenly; padded
    # output rows are zero and sliced off afterwards.
    tr = min(row_tile, _round_up(seq_out, 8))
    seq_pad = _round_up(seq_out, tr)
    if seq_pad != seq_out:
        k = jnp.pad(k, ((0, seq_pad - seq_out), (0, 0)))

    grid = (b, seq_pad // tr)
    itemsize = jnp.dtype(pos_embed.dtype).itemsize

    out = pl.pallas_call(
        _pos_interp_kernel,
        out_shape=jax.ShapeDtypeStruct((b, seq_pad, hidden), pos_embed.dtype),
        grid_spec=pltpu.PrefetchScalarGridSpec(
            num_scalar_prefetch=0,
            grid=grid,
            in_specs=[
                # Row tile of the interpolation matrix: varies along the row axis.
                pl.BlockSpec((tr, seq_in), lambda bi, ri: (ri, 0)),
                # Full (seq_in, hidden) pos-embed slab: constant block index across
                # the inner row axis -> stays VMEM-resident per batch (fetched once).
                pl.BlockSpec((1, seq_in, hidden), lambda bi, ri: (bi, 0, 0)),
            ],
            out_specs=pl.BlockSpec((1, tr, hidden), lambda bi, ri: (bi, ri, 0)),
        ),
        compiler_params=pltpu.CompilerParams(
            dimension_semantics=("parallel", "parallel")),
        cost_estimate=pl.CostEstimate(
            flops=2 * b * seq_pad * seq_in * hidden,
            transcendentals=0,
            bytes_accessed=(k.size + b * seq_in * hidden + b * seq_pad * hidden)
            * itemsize),
    )(k, pos_embed)

    return out[:, :seq_out, :]


# ----------------------- pure-JAX reference (direct 16-tap bicubic) ----------

def _reference_bicubic(img, new_h, new_w):
    """Channels-last direct bicubic, matching F.interpolate(mode='bicubic',
    align_corners=False) with border clamping."""
    _, in_h, in_w, _ = img.shape

    def coords(out_size, in_size):
        scale = in_size / out_size
        src = (jnp.arange(out_size, dtype=jnp.float32) + 0.5) * scale - 0.5
        f = jnp.floor(src)
        return f.astype(jnp.int32), src - f

    y0, ty = coords(new_h, in_h)
    x0, tx = coords(new_w, in_w)
    wy = jnp.stack(_cubic_weights(ty), axis=-1)                       # (new_h, 4)
    wx = jnp.stack(_cubic_weights(tx), axis=-1)                       # (new_w, 4)
    iy = jnp.clip(y0[:, None] + jnp.arange(-1, 3)[None, :], 0, in_h - 1)
    ix = jnp.clip(x0[:, None] + jnp.arange(-1, 3)[None, :], 0, in_w - 1)
    g = img[:, iy][:, :, :, ix]                      # (B, new_h, 4, new_w, 4, C)
    return jnp.einsum("Yi,Xj,bYiXjc->bYXc", wy, wx, g)


def reference_forward(pos_embed, old_grid, new_grid, num_detection_tokens):
    b, _, hidden = pos_embed.shape
    old_ph, old_pw = old_grid
    new_ph, new_pw = new_grid
    cls_tok = pos_embed[:, :1, :]
    det_tok = pos_embed[:, -num_detection_tokens:, :]
    patch = pos_embed[:, 1:-num_detection_tokens, :].reshape(b, old_ph, old_pw, hidden)
    patch = _reference_bicubic(patch, new_ph, new_pw)
    patch = patch.reshape(b, new_ph * new_pw, hidden)
    return jnp.concatenate([cls_tok, patch, det_tok], axis=1)


if __name__ == "__main__":
    # Small YOLOS-like config.
    batch = 2
    hidden_size = 128                # keep hidden a multiple of 128 (lane-dense stores)
    patch_size = 8
    image_size = (32, 48)            # config.image_size  -> 4 x 6 pre-training patch grid
    img_size = (64, 80)              # forward-time image -> 8 x 10 patch grid
    num_detection_tokens = 4

    old_grid = (image_size[0] // patch_size, image_size[1] // patch_size)
    new_grid = (img_size[0] // patch_size, img_size[1] // patch_size)
    seq_in = 1 + old_grid[0] * old_grid[1] + num_detection_tokens

    key = jax.random.PRNGKey(0)
    pos_embed = jax.random.normal(key, (batch, seq_in, hidden_size), jnp.float32)

    # Data-independent setup (static shapes only): 1-D bicubic weight matrices ->
    # Kronecker product -> block matrix with cls/det passthrough rows.  Cache /
    # precompute this per (config, img_size) in production.
    k_mat = build_interpolation_matrix(old_grid, new_grid, num_detection_tokens,
                                       dtype=jnp.float32)

    out = interpolate_pos_embed(pos_embed, k_mat)
    out = jax.block_until_ready(out)

    ref = reference_forward(pos_embed, old_grid, new_grid, num_detection_tokens)
    assert out.shape == ref.shape, (out.shape, ref.shape)
    max_err = float(jnp.max(jnp.abs(out - ref)))
    assert jnp.allclose(out, ref, atol=1e-3, rtol=1e-3), f"max abs err {max_err}"

    print("KERNEL_OK")
</pallas_src>

<mosaic_0001>
module attributes {stable_mosaic.version = 11 : i64} {
  func.func @_pos_interp_kernel(%arg0: i32, %arg1: i32, %arg2: memref<88x29xf32, #tpu.memory_space<vmem>>, %arg3: memref<1x29x128xf32, #tpu.memory_space<vmem>>, %arg4: memref<1x88x128xf32, #tpu.memory_space<vmem>>) attributes {dimension_semantics = [#tpu.dimension_semantics<parallel>, #tpu.dimension_semantics<parallel>], iteration_bounds = array<i64: 2, 1>, scalar_prefetch = 0 : i64, scratch_operands = 0 : i64, tpu.core_type = #tpu.core_type<tc>, window_params = [{transform_indices = @transform_0, window_bounds = array<i64: 88, 29>}, {transform_indices = @transform_1, window_bounds = array<i64: 1, 29, 128>}, {transform_indices = @transform_2, window_bounds = array<i64: 1, 88, 128>}]} {
    %c0 = arith.constant 0 : index
    %c0_0 = arith.constant 0 : index
    %0 = vector.load %arg2[%c0, %c0_0] : memref<88x29xf32, #tpu.memory_space<vmem>>, vector<88x29xf32>
    %c0_1 = arith.constant 0 : index
    %c0_2 = arith.constant 0 : index
    %c0_3 = arith.constant 0 : index
    %1 = vector.load %arg3[%c0_1, %c0_2, %c0_3] : memref<1x29x128xf32, #tpu.memory_space<vmem>>, vector<1x29x128xf32>
    %2 = vector.shape_cast %1 : vector<1x29x128xf32> to vector<29x128xf32>
    %cst = arith.constant dense<0.000000e+00> : vector<88x128xf32>
    %3 = tpu.matmul %0, %2, %cst {dimension_numbers = #tpu.dot_dimension_numbers<[1], [0], [0], [1], [0, 0, 1, 1], [], []>, precision = #tpu.contract_precision<fp32>} : vector<88x29xf32>, vector<29x128xf32>, vector<88x128xf32> -> vector<88x128xf32>
    %c0_4 = arith.constant 0 : index
    %c0_5 = arith.constant 0 : index
    %c0_6 = arith.constant 0 : index
    %4 = vector.load %arg4[%c0_4, %c0_5, %c0_6] : memref<1x88x128xf32, #tpu.memory_space<vmem>>, vector<1x88x128xf32>
    %5 = vector.shape_cast %4 : vector<1x88x128xf32> to vector<88x128xf32>
    %6 = vector.shape_cast %3 : vector<88x128xf32> to vector<1x88x128xf32>
    tpu.vector_store %arg4[%c0_4, %c0_5, %c0_6], %6 {strides = array<i32>} : memref<1x88x128xf32, #tpu.memory_space<vmem>>, vector<1x88x128xf32>,
    return
  }
  func.func @transform_0(%arg0: i32, %arg1: i32) -> (i32, i32) {
    %c0_i32 = arith.constant 0 : i32
    %c0_i32_0 = arith.constant 0 : i32
    return %arg1, %c0_i32 : i32, i32
  }
  func.func @transform_1(%arg0: i32, %arg1: i32) -> (i32, i32, i32) {
    %c0_i32 = arith.constant 0 : i32
    %c0_i32_0 = arith.constant 0 : i32
    %c0_i32_1 = arith.constant 0 : i32
    return %arg0, %c0_i32, %c0_i32_0 : i32, i32, i32
  }
  func.func @transform_2(%arg0: i32, %arg1: i32) -> (i32, i32, i32) {
    %c0_i32 = arith.constant 0 : i32
    %c0_i32_0 = arith.constant 0 : i32
    return %arg0, %arg1, %c0_i32 : i32, i32, i32
  }
}

</mosaic_0001>

<bundles_post_ra>
// kernel: interpolate_pos_embed.1
= control target key start
LH: loop header
LB: loop body
LE: loop exit
PB: predicated region body
PF: predicated region fallthrough
CT: control target
= control target key end

     0   :  { %s1680_s9 = smov 0   ;;  %s1682_s10 = smov 0   ;;  %s2227_s0 = inlined_call_operand.vmem [shape: f32[88,29], index: 0, kind: input, shape index: {}]   ;;  %s2228_s1 = inlined_call_operand.vmem [shape: f32[2,29,128], index: 1, kind: input, shape index: {}]   ;;  %s2229_s2 = inlined_call_operand.vmem [shape: f32[2,88,128], index: 2, kind: output, shape index: {}]  }
   0x1   :  { %s1684_s11 = smov 0  }
   0x2 LB: > { %s24_s12 = sadd.s32 1, %s1657_s10  ;;  %p1269_p0 = scmp.ge.s32.totalorder %s1661_s11, 1  ;;  %s1661_s11 = sphi %s1684_s11, %s12_s11   ;;  %s1657_s10 = sphi %s1682_s10, %s2231_s10   ;;  %s1653_s9 = sphi %s1680_s9, %s2230_s9  }
   0x3   : > { %p26_p1 = scmp.ge.s32.totalorder %s24_s12, 2  ;;  %p137_p2 = scmp.lt.s32.totalorder %s1661_s11, 3 }
   0x5   : > { %s2233_s12 = smov (%p26_p1, %s24_s12), 0  ;;  %p138_p3 = pnand %p1269_p0, %p137_p2 }
   0x6   : > { %p174_p4 = scmp.lt.s32.totalorder (!%p138_p3), %s1653_s9, 1 }
   0x7   : > { %141 = sbr.rel (%p138_p3) target bundleno = 359 (0x167), region = 28 }
   0xc   : > { %v189_v0 = vld [vmem:[%s2227_s0] sm:$0xff]  ;;  %vm204_vm0 = vcmask 236544   ;;  %v1663_v1 = vmov 0.0   ;;  %vm1664_vm1 = vmmov 0   ;;  %v190_v3 = vld [vmem:[%s2227_s0 + $0x8] sm:$0xff]  ;;  %v191_v4 = vld [vmem:[%s2227_s0 + $0x10] sm:$0xff] }
   0xd   : > { %1366 = vmatprep.subr.mxu0 %v1663_v1  ;;  %1374 = vmatprep.mubr.msk.f32.mxu0 %vm1664_vm1, %v1663_v1  ;;  %v206_v2 = vsel %vm204_vm0, %v189_v0, 0  ;;  %v192_v5 = vld [vmem:[%s2227_s0 + $0x18] sm:$0xff]  ;;  %s2235_s9 = smov (!%p174_p4, %s1653_s9), 1  ;;  %v209_v7 = vsel %vm204_vm0, %v190_v3, 0  ;;  %v212_v8 = vsel %vm204_vm0, %v191_v4, 0  ;;  %vm238_vm2 = vcmask 1044480  }
   0xe   : > { %v1716_v6 = vand.u32 4294901760, %v206_v2  ;;  %1407 = vmatprep.subr.mxu1 %v1663_v1  ;;  %1415 = vmatprep.mubr.msk.f32.mxu1 %vm1664_vm1, %v1663_v1  ;;  %v1723_v9 = vand.u32 4294901760, %v209_v7  ;;  %s1275_s21 = sshll.u32 %s2235_s9, 5  ;;  %v1729_v11 = vand.u32 4294901760, %v212_v8  ;;  %v215_v12 = vsel %vm204_vm0, %v192_v5, 0  ;;  %v193_v14 = vld [vmem:[%s2227_s0 + $0x20] sm:$0xff] }
   0xf   : > { %s178_s24 = scalar_lea.vmem %s2228_s1, %s1275_s21  ;;  %v1746_v23 = vand.u32 4294901760, %v215_v12  ;;  %v218_v27 = vsel %vm204_vm0, %v193_v14, 0  ;;  %v194_v36 = vld [vmem:[%s2227_s0 + $0x28] sm:$0xff]  ;;  %v195_v41 = vld [vmem:[%s2227_s0 + $0x30] sm:$0xff]  ;;  %v196_v59 = vld [vmem:[%s2227_s0 + $0x38] sm:$0xff]  ;;  %s1612_s15 = smul.u32 88, %s2235_s9 }
  0x10   : > { %v1727_v10 = vsub.f32 %v206_v2, %v1716_v6  ;;  %v1736_v13 = vsub.f32 %v209_v7, %v1723_v9  ;;  %v203_v15 = vld [vmem:[%s178_s24 + $0x18] sm:$0x1f]  ;;  %v202_v16 = vld [vmem:[%s178_s24 + $0x10] sm:$0xff]  ;;  %v201_v17 = vld [vmem:[%s178_s24 + $0x8] sm:$0xff]  ;;  %v1753_v26 = vsub.f32 %v212_v8, %v1729_v11  ;;  %v1785_v40 = vand.u32 4294901760, %v218_v27 }
  0x11   : > { %v240_v19 = vsel %vm238_vm2, %v203_v15, 0  ;;  %v1742_v20 = vand.u32 4294901760, %v202_v16  ;;  %v1744_v21 = vand.u32 4294901760, %v201_v17  ;;  %v200_v22 = vld [vmem:[%s178_s24] sm:$0xff]  ;;  %v1783_v39 = vsub.f32 %v215_v12, %v1746_v23  ;;  %s2183_s18 = scalar_lea.vmem %s2229_s2, %s1612_s15 }
  0x12   : > { %v313_v18 = vand.u32 4294901760, %v1727_v10  ;;  %v1748_v24 = vand.u32 4294901760, %v240_v19  ;;  %v1750_v25 = vand.u32 4294901760, %v200_v22  ;;  %v323_v30 = vand.u32 4294901760, %v1736_v13  ;;  %v197_v4 = vld [vmem:[%s2227_s0 + $0x40] sm:$0xff] }
  0x13   : > { %v1760_v29 = vsub.f32 %v202_v16, %v1742_v20  ;;  %v1764_v31 = vsub.f32 %v201_v17, %v1744_v21  ;;  %v333_v45 = vand.u32 4294901760, %v1753_v26  ;;  %v221_v48 = vsel %vm204_vm0, %v194_v36, 0  ;;  %v198_v16 = vld [vmem:[%s2227_s0 + $0x48] sm:$0xff] }
  0x14   : > { %v314_v28 = vsub.f32 %v1727_v10, %v313_v18  ;;  %1367 = vmatpush3.msra.mxu0 %v1748_v24  ;;  %v1768_v32 = vsub.f32 %v240_v19, %v1748_v24  ;;  %v1771_v33 = vsub.f32 %v200_v22, %v1750_v25  ;;  %v324_v44 = vsub.f32 %v1736_v13, %v323_v30 }
  0x15   : > { %1368 = vmatprep.subr.mxu0 %v1663_v1  ;;  %v455_v34 = vand.u32 4294901760, %v1760_v29  ;;  %v462_v35 = vand.u32 4294901760, %v1764_v31  ;;  %v224_v49 = vsel %vm204_vm0, %v195_v41, 0  ;;  %v1813_v53 = vsub.f32 %v218_v27, %v1785_v40  ;;  %v199_v41 = vld [vmem:[%s2227_s0 + $0x50] sm:$0xff] }
  0x16   : > { %1369 = vmatpush3.msra.mxu0 %v1742_v20  ;;  %v448_v37 = vand.u32 4294901760, %v1768_v32  ;;  %v469_v38 = vand.u32 4294901760, %v1771_v33  ;;  %v315_v42 = vand.u32 4294901760, %v314_v28  ;;  %v325_v54 = vand.u32 4294901760, %v324_v44 }
  0x17   : > { %1370 = vmatprep.subr.mxu0 %v1663_v1  ;;  %v456_v43 = vsub.f32 %v1760_v29, %v455_v34  ;;  %v463_v47 = vsub.f32 %v1764_v31, %v462_v35  ;;  %v334_v55 = vsub.f32 %v1753_v26, %v333_v45  ;;  %v343_v56 = vand.u32 4294901760, %v1783_v39 }
  0x18   : > { %1371 = vmatpush3.msra.mxu0 %v1744_v21  ;;  %v449_v46 = vsub.f32 %v1768_v32, %v448_v37  ;;  %v470_v52 = vsub.f32 %v1771_v33, %v469_v38  ;;  %v1820_v57 = vand.u32 4294901760, %v221_v48  ;;  %v353_v61 = vand.u32 4294901760, %v1813_v53 }
  0x19   : > { %1372 = vmatprep.subr.mxu0 %v1663_v1  ;;  %v457_v51 = vand.u32 4294901760, %v456_v43  ;;  %v464_v58 = vand.u32 4294901760, %v463_v47  ;;  %v1831_v62 = vand.u32 4294901760, %v224_v49  ;;  %v335_v63 = vand.u32 4294901760, %v334_v55 }
  0x1a   : > { %1373 = vmatpush3.msra.mxu0 %v1750_v25  ;;  %v450_v50 = vand.u32 4294901760, %v449_v46  ;;  %v471_v60 = vand.u32 4294901760, %v470_v52  ;;  %v344_v0 = vsub.f32 %v1783_v39, %v343_v56  ;;  %v1838_v2 = vsub.f32 %v221_v48, %v1820_v57 }
  0x1b   : > { %1375 = vmatmul.mubr.f32.vlgmr.msra.gmra.mxu0 %v315_v42  ;;  %1448 = vmatprep.subr.mxu0 %v1663_v1  ;;  %v227_v3 = vsel %vm204_vm0, %v196_v59, 0  ;;  %v354_v5 = vsub.f32 %v1813_v53, %v353_v61  ;;  %v1852_v7 = vsub.f32 %v224_v49, %v1831_v62  ;;  %v230_v15 = vsel %vm204_vm0, %v197_v4, 0 }
  0x1c   : > { %1408 = vmatpush3.msra.mxu1 %v450_v50  ;;  %1377 = vmatprep.mubr.msk.f32.mxu0 %vm1664_vm1, %v1663_v1  ;;  %v345_v8 = vand.u32 4294901760, %v344_v0  ;;  %v363_v12 = vand.u32 4294901760, %v1838_v2  ;;  %v1857_v14 = vand.u32 4294901760, %v227_v3  ;;  %v1879_v28 = vand.u32 4294901760, %v230_v15 }
  0x1d   : > { %1409 = vmatprep.subr.mxu1 %v1663_v1  ;;  %1449 = vmatpush3.msra.mxu0 %v1768_v32  ;;  %v355_v17 = vand.u32 4294901760, %v354_v5  ;;  %v373_v19 = vand.u32 4294901760, %v1852_v7  ;;  %v233_v36 = vsel %vm204_vm0, %v198_v16, 0  ;;  %v236_v48 = vsel %vm204_vm0, %v199_v41, 0 }
  0x1e   : > { %1410 = vmatpush3.msra.mxu1 %v457_v51  ;;  %1450 = vmatprep.subr.mxu0 %v1663_v1  ;;  %v364_v22 = vsub.f32 %v1838_v2, %v363_v12  ;;  %v1877_v27 = vsub.f32 %v227_v3, %v1857_v14  ;;  %v1895_v43 = vand.u32 4294901760, %v233_v36  ;;  %v1901_v47 = vsub.f32 %v230_v15, %v1879_v28 }
  0x1f   : > { %1378 = vmatmul.mubr.f32.gmra.mxu0 %v325_v54  ;;  %1411 = vmatprep.subr.mxu1 %v1663_v1  ;;  %v374_v42 = vsub.f32 %v1852_v7, %v373_v19  ;;  %v1910_v49 = vand.u32 4294901760, %v236_v48 }
  0x20   : > { %1412 = vmatpush3.msra.mxu1 %v464_v58  ;;  %1380 = vmatprep.mubr.msk.f32.mxu0 %vm1664_vm1, %v1663_v1  ;;  %v365_v44 = vand.u32 4294901760, %v364_v22  ;;  %v383_v46 = vand.u32 4294901760, %v1877_v27  ;;  %v393_v52 = vand.u32 4294901760, %v1901_v47  ;;  %v1919_v54 = vsub.f32 %v233_v36, %v1895_v43 }
  0x21   : > { %1413 = vmatprep.subr.mxu1 %v1663_v1  ;;  %1451 = vmatpush3.msra.mxu0 %v1760_v29  ;;  %v375_v50 = vand.u32 4294901760, %v374_v42 }
  0x22   : > { %1414 = vmatpush3.msra.mxu1 %v471_v60  ;;  %1452 = vmatprep.subr.mxu0 %v1663_v1  ;;  %v384_v51 = vsub.f32 %v1877_v27, %v383_v46  ;;  %v394_v58 = vsub.f32 %v1901_v47, %v393_v52  ;;  %v403_v59 = vand.u32 4294901760, %v1919_v54  ;;  %v1933_v60 = vsub.f32 %v236_v48, %v1910_v49 }
  0x23   : > { %1381 = vmatmul.mubr.f32.gmra.mxu0 %v335_v63  ;;  %1416 = vmatmul.mubr.f32.vlgmr.msra.gmra.mxu1 %v1716_v6 }
  0x24   : > { %1489 = vmatprep.subr.mxu1 %v1663_v1  ;;  %1383 = vmatprep.mubr.msk.f32.mxu0 %vm1664_vm1, %v1663_v1  ;;  %v385_v55 = vand.u32 4294901760, %v384_v51  ;;  %v395_v63 = vand.u32 4294901760, %v394_v58  ;;  %v404_v0 = vsub.f32 %v1919_v54, %v403_v59  ;;  %v413_v3 = vand.u32 4294901760, %v1933_v60 }
  0x25   : > { %1490 = vmatpush3.msra.mxu1 %v1748_v24  ;;  %1418 = vmatprep.mubr.msk.f32.mxu1 %vm1664_vm1, %v1663_v1 }
  0x26   : > { %1491 = vmatprep.subr.mxu1 %v1663_v1  ;;  %1453 = vmatpush3.msra.mxu0 %v1764_v31  ;;  %v405_v4 = vand.u32 4294901760, %v404_v0  ;;  %v414_v5 = vsub.f32 %v1933_v60, %v413_v3 }
  0x27   : > { %1384 = vmatmul.mubr.f32.gmra.mxu0 %v345_v8  ;;  %1419 = vmatmul.mubr.f32.gmra.mxu1 %v1723_v9 }
  0x28   : > { %1386 = vmatprep.mubr.msk.f32.mxu0 %vm1664_vm1, %v1663_v1  ;;  %1421 = vmatprep.mubr.msk.f32.mxu1 %vm1664_vm1, %v1663_v1  ;;  %v415_v8 = vand.u32 4294901760, %v414_v5 }
  0x29   : > { %1492 = vmatpush3.msra.mxu1 %v1742_v20  ;;  %1454 = vmatprep.subr.mxu0 %v1663_v1 }
  0x2a   : > { %1493 = vmatprep.subr.mxu1 %v1663_v1  ;;  %1455 = vmatpush3.msra.mxu0 %v1771_v33 }
  0x2b   : > { %1387 = vmatmul.mubr.f32.gmra.mxu0 %v355_v17  ;;  %1422 = vmatmul.mubr.f32.gmra.mxu1 %v1729_v11 }
  0x2c   : > { %1389 = vmatprep.mubr.msk.f32.mxu0 %vm1664_vm1, %v1663_v1  ;;  %1424 = vmatprep.mubr.msk.f32.mxu1 %vm1664_vm1, %v1663_v1 }
  0x2d   : > { %1494 = vmatpush3.msra.mxu1 %v1744_v21  ;;  %1530 = vmatprep.subr.mxu0 %v1663_v1 }
  0x2e   : > { %1495 = vmatprep.subr.mxu1 %v1663_v1 }
  0x2f   : > { %1390 = vmatmul.mubr.f32.gmra.mxu0 %v365_v44  ;;  %1425 = vmatmul.mubr.f32.gmra.mxu1 %v1746_v23 }
  0x30   : > { %1392 = vmatprep.mubr.msk.f32.mxu0 %vm1664_vm1, %v1663_v1  ;;  %1427 = vmatprep.mubr.msk.f32.mxu1 %vm1664_vm1, %v1663_v1 }
  0x31   : > { %1496 = vmatpush3.msra.mxu1 %v1750_v25 }
  0x32   : > { %1571 = vmatprep.subr.mxu1 %v1663_v1 }
  0x33   : > { %1393 = vmatmul.mubr.f32.gmra.mxu0 %v375_v50  ;;  %1428 = vmatmul.mubr.f32.gmra.mxu1 %v1785_v40 }
  0x34   : > { %1395 = vmatprep.mubr.msk.f32.mxu0 %vm1664_vm1, %v1663_v1  ;;  %1430 = vmatprep.mubr.msk.f32.mxu1 %vm1664_vm1, %v1663_v1 }
  0x37   : > { %1396 = vmatmul.mubr.f32.gmra.mxu0 %v385_v55  ;;  %1431 = vmatmul.mubr.f32.gmra.mxu1 %v1820_v57 }
  0x38   : > { %1398 = vmatprep.mubr.msk.f32.mxu0 %vm1664_vm1, %v1663_v1  ;;  %1433 = vmatprep.mubr.msk.f32.mxu1 %vm1664_vm1, %v1663_v1 }
  0x3b   : > { %1399 = vmatmul.mubr.f32.gmra.mxu0 %v395_v63  ;;  %1434 = vmatmul.mubr.f32.gmra.mxu1 %v1831_v62 }
  0x3c   : > { %1401 = vmatprep.mubr.msk.f32.mxu0 %vm1664_vm1, %v1663_v1  ;;  %1436 = vmatprep.mubr.msk.f32.mxu1 %vm1664_vm1, %v1663_v1 }
  0x3f   : > { %1402 = vmatmul.mubr.f32.gmra.mxu0 %v405_v4  ;;  %1437 = vmatmul.mubr.f32.gmra.mxu1 %v1857_v14 }
  0x40   : > { %1404 = vmatprep.mubr.msk.f32.mxu0 %vm1664_vm1, %v1663_v1  ;;  %1439 = vmatprep.mubr.msk.f32.mxu1 %vm1664_vm1, %v1663_v1 }
  0x43   : > { %1405 = vmatmul.mubr.f32.gmra.mxu0 %v415_v8  ;;  %1440 = vmatmul.mubr.f32.gmra.mxu1 %v1879_v28 }
  0x44   : > { %1442 = vmatprep.mubr.msk.f32.mxu1 %vm1664_vm1, %v1663_v1  ;;  %1456 = vmatprep.mubr.msk.f32.mxu0 %vm1664_vm1, %v1663_v1 }
  0x47   : > { %1443 = vmatmul.mubr.f32.gmra.mxu1 %v1895_v43  ;;  %1457 = vmatmul.mubr.f32.vlgmr.msra.gmra.mxu0 %v1727_v10 }
  0x48   : > { %1445 = vmatprep.mubr.msk.f32.mxu1 %vm1664_vm1, %v1663_v1  ;;  %1459 = vmatprep.mubr.msk.f32.mxu0 %vm1664_vm1, %v1663_v1 }
  0x49   : > { %1531 = vmatpush3.msra.mxu0 %v448_v37 }
  0x4a   : > { %1532 = vmatprep.subr.mxu0 %v1663_v1 }
  0x4b   : > { %1446 = vmatmul.mubr.f32.gmra.mxu1 %v1910_v49  ;;  %1460 = vmatmul.mubr.f32.gmra.mxu0 %v1736_v13 }
  0x4c   : > { %1462 = vmatprep.mubr.msk.f32.mxu0 %vm1664_vm1, %v1663_v1  ;;  %1497 = vmatprep.mubr.msk.f32.mxu1 %vm1664_vm1, %v1663_v1 }
  0x4d   : > { %1533 = vmatpush3.msra.mxu0 %v455_v34 }
  0x4e   : > { %1534 = vmatprep.subr.mxu0 %v1663_v1 }
  0x4f   : > { %1463 = vmatmul.mubr.f32.gmra.mxu0 %v1753_v26  ;;  %1498 = vmatmul.mubr.f32.vlgmr.msra.gmra.mxu1 %v313_v18 }
  0x50   : > { %1572 = vmatpush3.msra.mxu1 %v1748_v24  ;;  %1465 = vmatprep.mubr.msk.f32.mxu0 %vm1664_vm1, %v1663_v1 }
  0x51   : > { %1500 = vmatprep.mubr.msk.f32.mxu1 %vm1664_vm1, %v1663_v1  ;;  %1573 = vmatprep.subr.mxu1 %v1663_v1 }
  0x52   : > { %1574 = vmatpush3.msra.mxu1 %v1742_v20  ;;  %1535 = vmatpush3.msra.mxu0 %v462_v35 }
  0x53   : > { %1466 = vmatmul.mubr.f32.gmra.mxu0 %v1783_v39  ;;  %1501 = vmatmul.mubr.f32.gmra.mxu1 %v323_v30 }
  0x54   : > { %1468 = vmatprep.mubr.msk.f32.mxu0 %vm1664_vm1, %v1663_v1  ;;  %1503 = vmatprep.mubr.msk.f32.mxu1 %vm1664_vm1, %v1663_v1 }
  0x55   : > { %1575 = vmatprep.subr.mxu1 %v1663_v1  ;;  %1536 = vmatprep.subr.mxu0 %v1663_v1 }
  0x56   : > { %1576 = vmatpush3.msra.mxu1 %v1744_v21  ;;  %1537 = vmatpush3.msra.mxu0 %v469_v38 }
  0x57   : > { %1469 = vmatmul.mubr.f32.gmra.mxu0 %v1813_v53  ;;  %1504 = vmatmul.mubr.f32.gmra.mxu1 %v333_v45 }
  0x58   : > { %1471 = vmatprep.mubr.msk.f32.mxu0 %vm1664_vm1, %v1663_v1  ;;  %1506 = vmatprep.mubr.msk.f32.mxu1 %vm1664_vm1, %v1663_v1 }
  0x59   : > { %1577 = vmatprep.subr.mxu1 %v1663_v1 }
  0x5a   : > { %1578 = vmatpush3.msra.mxu1 %v1750_v25 }
  0x5b   : > { %1472 = vmatmul.mubr.f32.gmra.mxu0 %v1838_v2  ;;  %1507 = vmatmul.mubr.f32.gmra.mxu1 %v343_v56 }
  0x5c   : > { %1474 = vmatprep.mubr.msk.f32.mxu0 %vm1664_vm1, %v1663_v1  ;;  %1509 = vmatprep.mubr.msk.f32.mxu1 %vm1664_vm1, %v1663_v1 }
  0x5f   : > { %1475 = vmatmul.mubr.f32.gmra.mxu0 %v1852_v7  ;;  %1510 = vmatmul.mubr.f32.gmra.mxu1 %v353_v61 }
  0x60   : > { %1477 = vmatprep.mubr.msk.f32.mxu0 %vm1664_vm1, %v1663_v1  ;;  %1512 = vmatprep.mubr.msk.f32.mxu1 %vm1664_vm1, %v1663_v1 }
  0x63   : > { %1478 = vmatmul.mubr.f32.gmra.mxu0 %v1877_v27  ;;  %1513 = vmatmul.mubr.f32.gmra.mxu1 %v363_v12 }
  0x64   : > { %1480 = vmatprep.mubr.msk.f32.mxu0 %vm1664_vm1, %v1663_v1  ;;  %1515 = vmatprep.mubr.msk.f32.mxu1 %vm1664_vm1, %v1663_v1 }
  0x67   : > { %1481 = vmatmul.mubr.f32.gmra.mxu0 %v1901_v47  ;;  %1516 = vmatmul.mubr.f32.gmra.mxu1 %v373_v19 }
  0x68   : > { %1483 = vmatprep.mubr.msk.f32.mxu0 %vm1664_vm1, %v1663_v1  ;;  %1518 = vmatprep.mubr.msk.f32.mxu1 %vm1664_vm1, %v1663_v1 }
  0x6b   : > { %1484 = vmatmul.mubr.f32.gmra.mxu0 %v1919_v54  ;;  %1519 = vmatmul.mubr.f32.gmra.mxu1 %v383_v46 }
  0x6c   : > { %1486 = vmatprep.mubr.msk.f32.mxu0 %vm1664_vm1, %v1663_v1  ;;  %1521 = vmatprep.mubr.msk.f32.mxu1 %vm1664_vm1, %v1663_v1 }
  0x6f   : > { %1487 = vmatmul.mubr.f32.gmra.mxu0 %v1933_v60  ;;  %1522 = vmatmul.mubr.f32.gmra.mxu1 %v393_v52 }
  0x70   : > { %1524 = vmatprep.mubr.msk.f32.mxu1 %vm1664_vm1, %v1663_v1  ;;  %1538 = vmatprep.mubr.msk.f32.mxu0 %vm1664_vm1, %v1663_v1 }
  0x73   : > { %1525 = vmatmul.mubr.f32.gmra.mxu1 %v403_v59  ;;  %1539 = vmatmul.mubr.f32.vlgmr.msra.gmra.mxu0 %v1716_v6 }
  0x74   : > { %1527 = vmatprep.mubr.msk.f32.mxu1 %vm1664_vm1, %v1663_v1  ;;  %1541 = vmatprep.mubr.msk.f32.mxu0 %vm1664_vm1, %v1663_v1 }
  0x77   : > { %1528 = vmatmul.mubr.f32.gmra.mxu1 %v413_v3  ;;  %1542 = vmatmul.mubr.f32.gmra.mxu0 %v1723_v9 }
  0x78   : > { %1544 = vmatprep.mubr.msk.f32.mxu0 %vm1664_vm1, %v1663_v1  ;;  %1579 = vmatprep.mubr.msk.f32.mxu1 %vm1664_vm1, %v1663_v1 }
  0x7b   : > { %1545 = vmatmul.mubr.f32.gmra.mxu0 %v1729_v11  ;;  %1580 = vmatmul.mubr.f32.vlgmr.msra.gmra.mxu1 %v1716_v6 }
  0x7c   : > { %1547 = vmatprep.mubr.msk.f32.mxu0 %vm1664_vm1, %v1663_v1  ;;  %1582 = vmatprep.mubr.msk.f32.mxu1 %vm1664_vm1, %v1663_v1 }
  0x7f   : > { %1548 = vmatmul.mubr.f32.gmra.mxu0 %v1746_v23  ;;  %1583 = vmatmul.mubr.f32.gmra.mxu1 %v1723_v9 }
  0x80   : > { %1550 = vmatprep.mubr.msk.f32.mxu0 %vm1664_vm1, %v1663_v1  ;;  %1585 = vmatprep.mubr.msk.f32.mxu1 %vm1664_vm1, %v1663_v1 }
  0x83   : > { %1551 = vmatmul.mubr.f32.gmra.mxu0 %v1785_v40  ;;  %1586 = vmatmul.mubr.f32.gmra.mxu1 %v1729_v11 }
  0x84   : > { %1553 = vmatprep.mubr.msk.f32.mxu0 %vm1664_vm1, %v1663_v1  ;;  %1588 = vmatprep.mubr.msk.f32.mxu1 %vm1664_vm1, %v1663_v1 }
  0x87   : > { %1554 = vmatmul.mubr.f32.gmra.mxu0 %v1820_v57  ;;  %1589 = vmatmul.mubr.f32.gmra.mxu1 %v1746_v23 }
  0x88   : > { %1556 = vmatprep.mubr.msk.f32.mxu0 %vm1664_vm1, %v1663_v1  ;;  %1591 = vmatprep.mubr.msk.f32.mxu1 %vm1664_vm1, %v1663_v1 }
  0x8b   : > { %1557 = vmatmul.mubr.f32.gmra.mxu0 %v1831_v62  ;;  %1592 = vmatmul.mubr.f32.gmra.mxu1 %v1785_v40 }
  0x8c   : > { %1559 = vmatprep.mubr.msk.f32.mxu0 %vm1664_vm1, %v1663_v1  ;;  %1594 = vmatprep.mubr.msk.f32.mxu1 %vm1664_vm1, %v1663_v1 }
  0x8f   : > { %1560 = vmatmul.mubr.f32.gmra.mxu0 %v1857_v14  ;;  %1595 = vmatmul.mubr.f32.gmra.mxu1 %v1820_v57 }
  0x90   : > { %1562 = vmatprep.mubr.msk.f32.mxu0 %vm1664_vm1, %v1663_v1  ;;  %1597 = vmatprep.mubr.msk.f32.mxu1 %vm1664_vm1, %v1663_v1 }
  0x93   : > { %1563 = vmatmul.mubr.f32.gmra.mxu0 %v1879_v28  ;;  %1598 = vmatmul.mubr.f32.gmra.mxu1 %v1831_v62 }
  0x94   : > { %1565 = vmatprep.mubr.msk.f32.mxu0 %vm1664_vm1, %v1663_v1  ;;  %1600 = vmatprep.mubr.msk.f32.mxu1 %vm1664_vm1, %v1663_v1 }
  0x97   : > { %1566 = vmatmul.mubr.f32.gmra.mxu0 %v1895_v43  ;;  %1601 = vmatmul.mubr.f32.gmra.mxu1 %v1857_v14 }
  0x98   : > { %1568 = vmatprep.mubr.msk.f32.mxu0 %vm1664_vm1, %v1663_v1  ;;  %1603 = vmatprep.mubr.msk.f32.mxu1 %vm1664_vm1, %v1663_v1 }
  0x9b   : > { %1569 = vmatmul.mubr.f32.gmra.mxu0 %v1910_v49  ;;  %1604 = vmatmul.mubr.f32.gmra.mxu1 %v1879_v28 }
  0x9c   : > { %1606 = vmatprep.mubr.msk.f32.mxu1 %vm1664_vm1, %v1663_v1 }
  0x9f   : > { %1607 = vmatmul.mubr.f32.gmra.mxu1 %v1895_v43 }
  0xa0   : > { %1609 = vmatprep.mubr.msk.f32.mxu1 %vm1664_vm1, %v1663_v1 }
  0xa3   : > { %1610 = vmatmul.mubr.f32.gmra.mxu1 %v1910_v49 }
  0xdb   : > { %v317_v6 = vpop.f32.mrf.mxu0 }
  0xdd   : > { %v1376_v9 = vpop.f32.mrf.mxu0 }
  0xdf   : > { %v327_v10 = vpop.f32.mrf.mxu0 }
  0xe1   : > { %v1379_v11 = vpop.f32.mrf.mxu0 }
  0xe3   : > { %v337_v13 = vpop.f32.mrf.mxu0  ;;  %v508_v18 = vpop.f32.mrf.mxu1 }
  0xe4   : > { %v2129_v20 = vadd.f32 %v508_v18, %v317_v6 }
  0xe5   : > { %v1382_v21 = vpop.f32.mrf.mxu0  ;;  %v1417_v23 = vpop.f32.mrf.mxu1 }
  0xe7   : > { %v347_v24 = vpop.f32.mrf.mxu0  ;;  %v514_v25 = vpop.f32.mrf.mxu1 }
  0xe8   : > { %v2131_v26 = vadd.f32 %v514_v25, %v327_v10 }
  0xe9   : > { %v1385_v29 = vpop.f32.mrf.mxu0  ;;  %v1420_v30 = vpop.f32.mrf.mxu1 }
  0xeb   : > { %v357_v31 = vpop.f32.mrf.mxu0  ;;  %v520_v1 = vpop.f32.mrf.mxu1 }
  0xec   : > { %v2133_v32 = vadd.f32 %v520_v1, %v337_v13 }
  0xed   : > { %v1388_v33 = vpop.f32.mrf.mxu0  ;;  %v1423_v34 = vpop.f32.mrf.mxu1 }
  0xef   : > { %v367_v35 = vpop.f32.mrf.mxu0  ;;  %v526_v37 = vpop.f32.mrf.mxu1 }
  0xf0   : > { %v2135_v38 = vadd.f32 %v526_v37, %v347_v24 }
  0xf1   : > { %v1391_v39 = vpop.f32.mrf.mxu0  ;;  %v1426_v40 = vpop.f32.mrf.mxu1 }
  0xf3   : > { %v377_v45 = vpop.f32.mrf.mxu0  ;;  %v532_v53 = vpop.f32.mrf.mxu1 }
  0xf4   : > { %v2137_v56 = vadd.f32 %v532_v53, %v357_v31 }
  0xf5   : > { %v1394_v57 = vpop.f32.mrf.mxu0  ;;  %v1429_v61 = vpop.f32.mrf.mxu1 }
  0xf7   : > { %v387_v62 = vpop.f32.mrf.mxu0  ;;  %v538_v2 = vpop.f32.mrf.mxu1 }
  0xf8   : > { %v2139_v7 = vadd.f32 %v538_v2, %v367_v35 }
  0xf9   : > { %v1397_v12 = vpop.f32.mrf.mxu0  ;;  %v1432_v14 = vpop.f32.mrf.mxu1 }
  0xfb   : > { %v397_v15 = vpop.f32.mrf.mxu0  ;;  %v544_v16 = vpop.f32.mrf.mxu1 }
  0xfc   : > { %v2141_v17 = vadd.f32 %v544_v16, %v377_v45 }
  0xfd   : > { %v1400_v19 = vpop.f32.mrf.mxu0  ;;  %v1435_v22 = vpop.f32.mrf.mxu1 }
  0xff   : > { %v407_v27 = vpop.f32.mrf.mxu0  ;;  %v550_v28 = vpop.f32.mrf.mxu1 }
 0x100   : > { %v2143_v36 = vadd.f32 %v550_v28, %v387_v62 }
 0x101   : > { %v1403_v41 = vpop.f32.mrf.mxu0  ;;  %v1438_v42 = vpop.f32.mrf.mxu1 }
 0x103   : > { %v417_v43 = vpop.f32.mrf.mxu0  ;;  %v556_v44 = vpop.f32.mrf.mxu1 }
 0x104   : > { %v2145_v46 = vadd.f32 %v556_v44, %v397_v15 }
 0x105   : > { %v1406_v47 = vpop.f32.mrf.mxu0  ;;  %v1441_v48 = vpop.f32.mrf.mxu1 }
 0x107   : > { %v562_v49 = vpop.f32.mrf.mxu1  ;;  %v648_v50 = vpop.f32.mrf.mxu0 }
 0x108   : > { %v2147_v51 = vadd.f32 %v562_v49, %v407_v27  ;;  %v649_v42 = vadd.f32 %v648_v50, %v2129_v20 }
 0x109   : > { %v1444_v52 = vpop.f32.mrf.mxu1  ;;  %v1458_v54 = vpop.f32.mrf.mxu0 }
 0x10b   : > { %v568_v55 = vpop.f32.mrf.mxu1  ;;  %v655_v58 = vpop.f32.mrf.mxu0 }
 0x10c   : > { %v2149_v59 = vadd.f32 %v568_v55, %v417_v43  ;;  %v656_v52 = vadd.f32 %v655_v58, %v2131_v26 }
 0x10d   : > { %v1447_v60 = vpop.f32.mrf.mxu1  ;;  %v1461_v63 = vpop.f32.mrf.mxu0 }
 0x10f   : > { %v662_v0 = vpop.f32.mrf.mxu0  ;;  %v795_v3 = vpop.f32.mrf.mxu1 }
 0x110   : > { %v796_v47 = vadd.f32 %v795_v3, %v649_v42  ;;  %v663_v3 = vadd.f32 %v662_v0, %v2133_v32 }
 0x111   : > { %v1464_v4 = vpop.f32.mrf.mxu0  ;;  %v1499_v5 = vpop.f32.mrf.mxu1 }
 0x113   : > { %v669_v8 = vpop.f32.mrf.mxu0  ;;  %v803_v6 = vpop.f32.mrf.mxu1 }
 0x114   : > { %v804_v20 = vadd.f32 %v803_v6, %v656_v52 }
 0x115   : > { %v1467_v9 = vpop.f32.mrf.mxu0  ;;  %v1502_v10 = vpop.f32.mrf.mxu1 }
 0x117   : > { %v2151_v11 = vpop.f32.mrf.mxu0  ;;  %v811_v13 = vpop.f32.mrf.mxu1 }
 0x118   : > { %v812_v58 = vadd.f32 %v811_v13, %v663_v3  ;;  %v677_v0 = vadd.f32 %v2151_v11, %v2137_v56 }
 0x119   : > { %v1470_v18 = vpop.f32.mrf.mxu0  ;;  %v1505_v21 = vpop.f32.mrf.mxu1 }
 0x11b   : > { %v2153_v23 = vpop.f32.mrf.mxu0  ;;  %v819_v24 = vpop.f32.mrf.mxu1 }
 0x11d   : > { %v1473_v25 = vpop.f32.mrf.mxu0  ;;  %v1508_v29 = vpop.f32.mrf.mxu1 }
 0x11e   : > { %v670_v25 = vadd.f32 %v669_v8, %v2135_v38 }
 0x11f   : > { %v2155_v30 = vpop.f32.mrf.mxu0  ;;  %v827_v31 = vpop.f32.mrf.mxu1 }
 0x120   : > { %v691_v42 = vadd.f32 %v2155_v30, %v2141_v17 }
 0x121   : > { %v1476_v1 = vpop.f32.mrf.mxu0  ;;  %v1511_v33 = vpop.f32.mrf.mxu1 }
 0x122   : > { %v820_v33 = vadd.f32 %v819_v24, %v670_v25 }
 0x123   : > { %v2157_v34 = vpop.f32.mrf.mxu0  ;;  %v2159_v35 = vpop.f32.mrf.mxu1 }
 0x124   : > { %v698_v52 = vadd.f32 %v2157_v34, %v2143_v36 }
 0x125   : > { %v1479_v37 = vpop.f32.mrf.mxu0  ;;  %v1514_v39 = vpop.f32.mrf.mxu1 }
 0x127   : > { %v2161_v40 = vpop.f32.mrf.mxu0  ;;  %v2163_v45 = vpop.f32.mrf.mxu1 }
 0x129   : > { %v1482_v53 = vpop.f32.mrf.mxu0  ;;  %v1517_v57 = vpop.f32.mrf.mxu1 }
 0x12b   : > { %v2165_v61 = vpop.f32.mrf.mxu0  ;;  %v2167_v62 = vpop.f32.mrf.mxu1 }
 0x12c   : > { %v852_v17 = vadd.f32 %v2167_v62, %v698_v52 }
 0x12d   : > { %v1485_v2 = vpop.f32.mrf.mxu0  ;;  %v1520_v12 = vpop.f32.mrf.mxu1 }
 0x12e   : > { %v828_v2 = vadd.f32 %v827_v31, %v677_v0 }
 0x12f   : > { %v2169_v14 = vpop.f32.mrf.mxu0  ;;  %v2171_v15 = vpop.f32.mrf.mxu1 }
 0x131   : > { %v1488_v16 = vpop.f32.mrf.mxu0  ;;  %v1523_v19 = vpop.f32.mrf.mxu1 }
 0x132   : > { %v684_v16 = vadd.f32 %v2153_v23, %v2139_v7  ;;  %v844_v7 = vadd.f32 %v2163_v45, %v691_v42 }
 0x133   : > { %v2173_v22 = vpop.f32.mrf.mxu1  ;;  %v958_v27 = vpop.f32.mrf.mxu0 }
 0x134   : > { %v959_v54 = vadd.f32 %v958_v27, %v796_v47 }
 0x135   : > { %v1526_v28 = vpop.f32.mrf.mxu1  ;;  %v1540_v41 = vpop.f32.mrf.mxu0 }
 0x136   : > { %v836_v28 = vadd.f32 %v2159_v35, %v684_v16 }
 0x137   : > { %v2177_v43 = vpop.f32.mrf.mxu1  ;;  %v964_v44 = vpop.f32.mrf.mxu0 }
 0x138   : > { %v965_v5 = vadd.f32 %v964_v44, %v804_v20 }
 0x139   : > { %v1529_v48 = vpop.f32.mrf.mxu1  ;;  %v1543_v49 = vpop.f32.mrf.mxu0 }
 0x13b   : > { %v970_v55 = vpop.f32.mrf.mxu0  ;;  %v1093_v60 = vpop.f32.mrf.mxu1 }
 0x13c   : > { %v1094_v50 = vadd.f32 %v1093_v60, %v959_v54  ;;  %v971_v29 = vadd.f32 %v970_v55, %v812_v58 }
 0x13d   : > { %v1546_v63 = vpop.f32.mrf.mxu0  ;;  %v1581_v4 = vpop.f32.mrf.mxu1 }
 0x13e   : > { %1157 = vst [vmem:[%s2183_s18] sm:$0xff] %v1094_v50  ;;  %v705_v50 = vadd.f32 %v2161_v40, %v2145_v46 }
 0x13f   : > { %v976_v9 = vpop.f32.mrf.mxu0  ;;  %v1099_v26 = vpop.f32.mrf.mxu1 }
 0x140   : > { %v1100_v10 = vadd.f32 %v1099_v26, %v965_v5  ;;  %v977_v53 = vadd.f32 %v976_v9, %v820_v33  ;;  %v860_v36 = vadd.f32 %v2171_v15, %v705_v50  ;;  %v712_v9 = vadd.f32 %v2165_v61, %v2147_v51 }
 0x141   : > { %v1549_v18 = vpop.f32.mrf.mxu0  ;;  %v1584_v21 = vpop.f32.mrf.mxu1  ;;  %v719_v15 = vadd.f32 %v2169_v14, %v2149_v59 }
 0x142   : > { %1158 = vst [vmem:[%s2183_s18 + $0x8] sm:$0xff] %v1100_v10  ;;  %v868_v46 = vadd.f32 %v2173_v22, %v712_v9 }
 0x143   : > { %v982_v1 = vpop.f32.mrf.mxu0  ;;  %v1105_v6 = vpop.f32.mrf.mxu1 }
 0x144   : > { %v1106_v37 = vadd.f32 %v1105_v6, %v971_v29  ;;  %v983_v19 = vadd.f32 %v982_v1, %v828_v2  ;;  %v876_v29 = vadd.f32 %v2177_v43, %v719_v15 }
 0x145   : > { %v1552_v39 = vpop.f32.mrf.mxu0  ;;  %v1587_v32 = vpop.f32.mrf.mxu1 }
 0x146   : > { %1159 = vst [vmem:[%s2183_s18 + $0x10] sm:$0xff] %v1106_v37 }
 0x147   : > { %v988_v13 = vpop.f32.mrf.mxu0  ;;  %v1111_v57 = vpop.f32.mrf.mxu1 }
 0x148   : > { %v1112_v12 = vadd.f32 %v1111_v57, %v977_v53  ;;  %v989_v31 = vadd.f32 %v988_v13, %v836_v28 }
 0x149   : > { %v1555_v38 = vpop.f32.mrf.mxu0  ;;  %v1590_v8 = vpop.f32.mrf.mxu1 }
 0x14a   : > { %1160 = vst [vmem:[%s2183_s18 + $0x18] sm:$0xff] %v1112_v12 }
 0x14b   : > { %v994_v24 = vpop.f32.mrf.mxu0  ;;  %v1117_v27 = vpop.f32.mrf.mxu1 }
 0x14c   : > { %v1118_v56 = vadd.f32 %v1117_v27, %v983_v19  ;;  %v995_v35 = vadd.f32 %v994_v24, %v844_v7 }
 0x14d   : > { %v1558_v11 = vpop.f32.mrf.mxu0  ;;  %v1593_v41 = vpop.f32.mrf.mxu1 }
 0x14e   : > { %1161 = vst [vmem:[%s2183_s18 + $0x20] sm:$0xff] %v1118_v56 }
 0x14f   : > { %v1000_v44 = vpop.f32.mrf.mxu0  ;;  %v1123_v47 = vpop.f32.mrf.mxu1 }
 0x150   : > { %v1124_v23 = vadd.f32 %v1123_v47, %v989_v31  ;;  %v1001_v45 = vadd.f32 %v1000_v44, %v852_v17 }
 0x151   : > { %v1561_v48 = vpop.f32.mrf.mxu0  ;;  %v1596_v49 = vpop.f32.mrf.mxu1 }
 0x152   : > { %1162 = vst [vmem:[%s2183_s18 + $0x28] sm:$0xff] %v1124_v23 }
 0x153   : > { %v1006_v54 = vpop.f32.mrf.mxu0  ;;  %v1129_v55 = vpop.f32.mrf.mxu1 }
 0x154   : > { %v1130_v30 = vadd.f32 %v1129_v55, %v995_v35  ;;  %v1007_v62 = vadd.f32 %v1006_v54, %v860_v36 }
 0x155   : > { %v1564_v60 = vpop.f32.mrf.mxu0  ;;  %v1599_v20 = vpop.f32.mrf.mxu1 }
 0x156   : > { %1163 = vst [vmem:[%s2183_s18 + $0x30] sm:$0xff] %v1130_v30 }
 0x157   : > { %v1012_v63 = vpop.f32.mrf.mxu0  ;;  %v1135_v4 = vpop.f32.mrf.mxu1 }
 0x158   : > { %v1136_v34 = vadd.f32 %v1135_v4, %v1001_v45  ;;  %v1013_v21 = vadd.f32 %v1012_v63, %v868_v46 }
 0x159   : > { %v1567_v3 = vpop.f32.mrf.mxu0  ;;  %v1602_v5 = vpop.f32.mrf.mxu1 }
 0x15a   : > { %1164 = vst [vmem:[%s2183_s18 + $0x38] sm:$0xff] %v1136_v34 }
 0x15b   : > { %v1018_v26 = vpop.f32.mrf.mxu0  ;;  %v1141_v58 = vpop.f32.mrf.mxu1 }
 0x15c   : > { %v1142_v40 = vadd.f32 %v1141_v58, %v1007_v62  ;;  %v1019_v1 = vadd.f32 %v1018_v26, %v876_v29 }
 0x15d   : > { %v1605_v10 = vpop.f32.mrf.mxu1  ;;  %v1570_v18 = vpop.f32.mrf.mxu0 }
 0x15e   : > { %1165 = vst [vmem:[%s2183_s18 + $0x40] sm:$0xff] %v1142_v40 }
 0x15f   : > { %v1147_v25 = vpop.f32.mrf.mxu1 }
 0x160   : > { %v1148_v51 = vadd.f32 %v1147_v25, %v1013_v21 }
 0x161   : > { %v1608_v61 = vpop.f32.mrf.mxu1 }
 0x162   : > { %1166 = vst [vmem:[%s2183_s18 + $0x48] sm:$0xff] %v1148_v51 }
 0x163   : > { %v1153_v6 = vpop.f32.mrf.mxu1 }
 0x164   : > { %v1154_v33 = vadd.f32 %v1153_v6, %v1019_v1 }
 0x165   : > { %v1611_v37 = vpop.f32.mrf.mxu1 }
 0x166   : > { %1167 = vst [vmem:[%s2183_s18 + $0x50] sm:$0xff] %v1154_v33 }
 0x167 PF: > { %s12_s11 = sadd.s32 1, %s1661_s11   ;;  %s2230_s9 = smov %s1657_s10 }
 0x168   : > { %p9_p5 = scmp.ge.s32.totalorder %s12_s11, 4   ;;  %s2231_s10 = smov %s2233_s12 }
 0x16a   :  { %11 = sbr.rel (!%p9_p5) target bundleno = 2 (0x2), region = 61 }

</bundles_post_ra>
